<compile_context>
chip_gen: v6e
topology: v6e:2x2x1
jax: 0.10.0
libtpu: 0.0.40
codegen_flags: <defaults>
</compile_context>

<pallas_src>
import functools

import numpy as np
import jax
import jax.numpy as jnp
from jax.experimental import pallas as pl
from jax.experimental.pallas import tpu as pltpu


# ----------------------------------------------------------------------------
# 'add' policy: sum(x)
# ----------------------------------------------------------------------------

def _add_kernel(*refs):
    """refs = (in_0, ..., in_{K-1}, out); elementwise sum on the VPU."""
    out_ref = refs[-1]
    acc = refs[0][...]
    for r in refs[1:-1]:
        acc = acc + r[...]
    out_ref[...] = acc


def _choose_lane_layout(total):
    """Pick a lane-dense (rows, lane) factorization of `total`.

    Prefers a lane width that is a multiple of 128 and divides `total` exactly
    (no padding / extra HBM copy). Falls back to padding to (8k, 128)."""
    for lane in (2048, 1024, 512, 256, 128):
        if total % lane == 0:
            return total // lane, lane, 0
    lane = 128
    rows = -(-total // lane)          # ceil
    rows = ((rows + 7) // 8) * 8      # sublane multiple
    pad = rows * lane - total
    return rows, lane, pad


def _choose_row_tile(rows, lane, n_bufs, itemsize):
    """Largest row tile (multiple of 8, dividing rows) that keeps all
    double-buffered blocks under ~12 MiB (headroom below v5e's 16 MiB default)."""
    budget = 12 * 1024 * 1024
    max_elems = max(8 * 128, budget // (2 * n_bufs * itemsize))
    if rows * lane <= max_elems:
        return rows                    # single block over rows (full-dim, legal)
    max_rows = max(8, max_elems // lane)
    t = (max_rows // 8) * 8
    while t >= 8:
        if rows % t == 0:
            return t
        t -= 8
    return rows                        # rare fallback: un-tiled


def merge_add(xs):
    shape = xs[0].shape
    dtype = xs[0].dtype
    for x in xs:
        assert x.shape == shape and x.dtype == dtype, "sum() needs matching tensors"

    total = int(np.prod(shape))
    rows, lane, pad = _choose_lane_layout(total)

    flats = []
    for x in xs:
        f = x.reshape(-1)
        if pad:
            f = jnp.pad(f, (0, pad))   # fallback only (lane did not divide total)
        flats.append(f.reshape(rows, lane))

    row_tile = _choose_row_tile(rows, lane, n_bufs=len(xs) + 1,
                                itemsize=jnp.dtype(dtype).itemsize)
    grid = (rows // row_tile,)
    spec = pl.BlockSpec((row_tile, lane), lambda i: (i, 0))

    out = pl.pallas_call(
        _add_kernel,
        out_shape=jax.ShapeDtypeStruct((rows, lane), dtype),
        grid=grid,
        in_specs=[spec] * len(xs),
        out_specs=spec,
        compiler_params=pltpu.CompilerParams(dimension_semantics=("parallel",)),
    )(*flats)

    out = out.reshape(-1)
    if pad:
        out = out[:total]
    return out.reshape(shape)


# ----------------------------------------------------------------------------
# 'cat' policy: torch.cat(x, dim=1) on NCHW tensors
# ----------------------------------------------------------------------------

def _cat_kernel(*args, channels):
    """args = (in_0, ..., in_{K-1}, out); copy each input into its channel slice."""
    out_ref = args[-1]
    off = 0
    for r, c in zip(args[:-1], channels):
        out_ref[:, off:off + c, :] = r[...]
        off += c


def _pick_hw_tile(hw, c_total, itemsize):
    """Largest H*W tile that is a multiple of 128, divides H*W, and keeps the
    double-buffered (inputs + output) footprint under ~12 MiB."""
    budget = 12 * 1024 * 1024
    for cand in (8192, 4096, 2048, 1024, 512, 256, 128):
        if hw % cand == 0 and 4 * c_total * cand * itemsize <= budget:
            return cand
    return hw                          # fallback: whole spatial extent per block


def merge_cat(xs):
    n, h, w = xs[0].shape[0], xs[0].shape[2], xs[0].shape[3]
    dtype = xs[0].dtype
    for x in xs:
        assert x.shape[0] == n and x.shape[2:] == (h, w) and x.dtype == dtype, \
            "cat(dim=1) needs matching N/H/W and dtype"

    chans = [int(x.shape[1]) for x in xs]
    c_total = sum(chans)
    hw = h * w
    t_hw = _pick_hw_tile(hw, c_total, jnp.dtype(dtype).itemsize)
    n_hw = hw // t_hw

    # free reshape NCHW -> (N, C, H*W): last (lane) dim is H*W, tiled in 128-multiples
    flats = [x.reshape(n, c, hw) for x, c in zip(xs, chans)]

    in_specs = [pl.BlockSpec((1, c, t_hw), lambda b, s: (b, 0, s)) for c in chans]
    out_specs = pl.BlockSpec((1, c_total, t_hw), lambda b, s: (b, 0, s))

    out = pl.pallas_call(
        functools.partial(_cat_kernel, channels=tuple(chans)),
        out_shape=jax.ShapeDtypeStruct((n, c_total, hw), dtype),
        grid=(n, n_hw),
        in_specs=in_specs,
        out_specs=out_specs,
        compiler_params=pltpu.CompilerParams(
            dimension_semantics=("parallel", "parallel")),
    )(*flats)

    return out.reshape(n, c_total, h, w)


# ----------------------------------------------------------------------------
# MergeBlock forward (matches the PyTorch module semantics)
# ----------------------------------------------------------------------------

def merge_block_forward(xs, policy):
    if policy == "add":
        return merge_add(list(xs))
    elif policy == "cat":
        return merge_cat(list(xs))
    else:
        raise ValueError(
            "`merge_policy` must be one of: ['add', 'cat'], got {}".format(policy))


if __name__ == "__main__":
    key = jax.random.PRNGKey(0)
    k1, k2, k3, k4, k5, k6, k7 = jax.random.split(key, 7)

    # ---- policy == 'add': four same-shape feature maps ----------------------
    xs_add = [jax.random.normal(k, (2, 4, 16, 16), jnp.float32)
              for k in (k1, k2, k3, k4)]
    out_add = jax.block_until_ready(merge_block_forward(xs_add, "add"))
    ref_add = xs_add[0] + xs_add[1] + xs_add[2] + xs_add[3]
    assert out_add.shape == (2, 4, 16, 16), out_add.shape
    np.testing.assert_allclose(np.asarray(out_add), np.asarray(ref_add),
                               rtol=1e-6, atol=1e-6)

    # ---- policy == 'cat': different channel counts, same N/H/W --------------
    xs_cat = [jax.random.normal(k, (2, c, 16, 16), jnp.float32)
              for k, c in zip((k5, k6, k7), (4, 8, 16))]
    out_cat = jax.block_until_ready(merge_block_forward(xs_cat, "cat"))
    ref_cat = jnp.concatenate(xs_cat, axis=1)
    assert out_cat.shape == (2, 28, 16, 16), out_cat.shape
    np.testing.assert_allclose(np.asarray(out_cat), np.asarray(ref_cat),
                               rtol=0, atol=0)

    print("KERNEL_OK")
</pallas_src>

<mosaic_0001>
module attributes {stable_mosaic.version = 11 : i64} {
  func.func @_add_kernel(%arg0: i32, %arg1: memref<1x2048xf32, #tpu.memory_space<vmem>>, %arg2: memref<1x2048xf32, #tpu.memory_space<vmem>>, %arg3: memref<1x2048xf32, #tpu.memory_space<vmem>>, %arg4: memref<1x2048xf32, #tpu.memory_space<vmem>>, %arg5: memref<1x2048xf32, #tpu.memory_space<vmem>>) attributes {dimension_semantics = [#tpu.dimension_semantics<parallel>], iteration_bounds = array<i64: 1>, scalar_prefetch = 0 : i64, scratch_operands = 0 : i64, tpu.core_type = #tpu.core_type<tc>, window_params = [{transform_indices = @transform_0, window_bounds = array<i64: 1, 2048>}, {transform_indices = @transform_1, window_bounds = array<i64: 1, 2048>}, {transform_indices = @transform_2, window_bounds = array<i64: 1, 2048>}, {transform_indices = @transform_3, window_bounds = array<i64: 1, 2048>}, {transform_indices = @transform_4, window_bounds = array<i64: 1, 2048>}]} {
    %c0 = arith.constant 0 : index
    %c0_0 = arith.constant 0 : index
    %0 = vector.load %arg1[%c0, %c0_0] : memref<1x2048xf32, #tpu.memory_space<vmem>>, vector<1x2048xf32>
    %c0_1 = arith.constant 0 : index
    %c0_2 = arith.constant 0 : index
    %1 = vector.load %arg2[%c0_1, %c0_2] : memref<1x2048xf32, #tpu.memory_space<vmem>>, vector<1x2048xf32>
    %2 = arith.addf %0, %1 : vector<1x2048xf32>
    %c0_3 = arith.constant 0 : index
    %c0_4 = arith.constant 0 : index
    %3 = vector.load %arg3[%c0_3, %c0_4] : memref<1x2048xf32, #tpu.memory_space<vmem>>, vector<1x2048xf32>
    %4 = arith.addf %2, %3 : vector<1x2048xf32>
    %c0_5 = arith.constant 0 : index
    %c0_6 = arith.constant 0 : index
    %5 = vector.load %arg4[%c0_5, %c0_6] : memref<1x2048xf32, #tpu.memory_space<vmem>>, vector<1x2048xf32>
    %6 = arith.addf %4, %5 : vector<1x2048xf32>
    %c0_7 = arith.constant 0 : index
    %c0_8 = arith.constant 0 : index
    %7 = vector.load %arg5[%c0_7, %c0_8] : memref<1x2048xf32, #tpu.memory_space<vmem>>, vector<1x2048xf32>
    tpu.vector_store %arg5[%c0_7, %c0_8], %6 {strides = array<i32>} : memref<1x2048xf32, #tpu.memory_space<vmem>>, vector<1x2048xf32>,
    return
  }
  func.func @transform_0(%arg0: i32) -> (i32, i32) {
    %c0_i32 = arith.constant 0 : i32
    %c0_i32_0 = arith.constant 0 : i32
    return %arg0, %c0_i32 : i32, i32
  }
  func.func @transform_1(%arg0: i32) -> (i32, i32) {
    %c0_i32 = arith.constant 0 : i32
    %c0_i32_0 = arith.constant 0 : i32
    return %arg0, %c0_i32 : i32, i32
  }
  func.func @transform_2(%arg0: i32) -> (i32, i32) {
    %c0_i32 = arith.constant 0 : i32
    %c0_i32_0 = arith.constant 0 : i32
    return %arg0, %c0_i32 : i32, i32
  }
  func.func @transform_3(%arg0: i32) -> (i32, i32) {
    %c0_i32 = arith.constant 0 : i32
    %c0_i32_0 = arith.constant 0 : i32
    return %arg0, %c0_i32 : i32, i32
  }
  func.func @transform_4(%arg0: i32) -> (i32, i32) {
    %c0_i32 = arith.constant 0 : i32
    %c0_i32_0 = arith.constant 0 : i32
    return %arg0, %c0_i32 : i32, i32
  }
}

</mosaic_0001>

<bundles_post_ra>
// kernel: tpu_custom_call.1
= control target key start
LH: loop header
LB: loop body
LE: loop exit
PB: predicated region body
PF: predicated region fallthrough
CT: control target
= control target key end

     0   :  { %9 = vsyncpa [#allocation3], 0  ;;  %s256_s0 = inlined_call_operand.hbm [shape: f32[1,2048], index: 0, kind: input, shape index: {}]   ;;  %s257_s1 = inlined_call_operand.hbm [shape: f32[1,2048], index: 1, kind: input, shape index: {}]   ;;  %s258_s2 = inlined_call_operand.hbm [shape: f32[1,2048], index: 2, kind: input, shape index: {}]   ;;  %s259_s3 = inlined_call_operand.hbm [shape: f32[1,2048], index: 3, kind: input, shape index: {}]   ;;  %s260_s4 = inlined_call_operand.hbm [shape: f32[1,2048], index: 4, kind: output, shape index: {}]  }
   0x1   :  { %10 = vsyncpa [#allocation6], 0 }
   0x2   :  { %11 = vsyncpa [#allocation9], 0 }
   0x3   :  { %12 = vsyncpa [#allocation4], 0  ;;  %s211_s15 = smov [#allocation5]   ;;  %s212_s17 = smov [#allocation2]  }
   0x4   :  { %s29_s16 = sshll.u32 %s211_s15, 4  ;;  %s19_s18 = sshll.u32 %s212_s17, 4  ;;  %s30_s16 = int_to_ptr.vmem [resolvable:$true] %s29_s16  ;;  %s20_s18 = int_to_ptr.vmem [resolvable:$true] %s19_s18 }
   0x5   :  { %s111_s19 = scalar_lea.vmem %s30_s16, 256  ;;  %p116_p1 = scmp.lt.s32.totalorder %s30_s16, %s30_s16 }
   0x6   :  { %p112_p0 = scmp.ne.s32.totalorder %s30_s16, %s111_s19  ;;  %p117_p2 = scmp.lt.s32.totalorder %s111_s19, %s111_s19 }
   0x8   :  { %p118_p3 = por %p117_p2, %p116_p1 }
   0xa   :  { %p119_p4 = pnand %p118_p3, %p112_p0 }
   0xc   :  { %122 = shalt.err (!%p119_p4)
}
   0xd   :  { %32 = dma.hbm_to_vmem [thread:$0]  %s257_s1, 256, %s30_s16, [#allocation6]  }
   0xe   :  { %s131_s22 = scalar_lea.vmem %s20_s18, 256  ;;  %p136_p6 = scmp.lt.s32.totalorder %s20_s18, %s20_s18 }
   0xf   :  { %p132_p5 = scmp.ne.s32.totalorder %s20_s18, %s131_s22  ;;  %p137_p7 = scmp.lt.s32.totalorder %s131_s22, %s131_s22 }
  0x11   :  { %p138_p8 = por %p137_p7, %p136_p6 }
  0x13   :  { %p139_p9 = pnand %p138_p8, %p132_p5 }
  0x15   :  { %142 = shalt.err (!%p139_p9)
}
  0x16   :  { %22 = dma.hbm_to_vmem [thread:$0]  %s256_s0, 256, %s20_s18, [#allocation3]  }
  0x17   :  { %s213_s25 = smov [#allocation7]   ;;  %s214_s27 = smov [#allocation8]  }
  0x18   :  { %s39_s26 = sshll.u32 %s213_s25, 4  ;;  %s49_s28 = sshll.u32 %s214_s27, 4  ;;  %s40_s26 = int_to_ptr.vmem [resolvable:$true] %s39_s26  ;;  %s50_s28 = int_to_ptr.vmem [resolvable:$true] %s49_s28 }
  0x19   :  { %s151_s29 = scalar_lea.vmem %s40_s26, 256  ;;  %p156_p11 = scmp.lt.s32.totalorder %s40_s26, %s40_s26 }
  0x1a   :  { %p152_p10 = scmp.ne.s32.totalorder %s40_s26, %s151_s29  ;;  %p157_p12 = scmp.lt.s32.totalorder %s151_s29, %s151_s29 }
  0x1c   :  { %p158_p13 = por %p157_p12, %p156_p11 }
  0x1e   :  { %p159_p0 = pnand %p158_p13, %p152_p10 }
  0x20   :  { %162 = shalt.err (!%p159_p0)
}
  0x21   :  { %42 = dma.hbm_to_vmem [thread:$0]  %s258_s2, 256, %s40_s26, [#allocation6]  }
  0x22   :  { %s171_s5 = scalar_lea.vmem %s50_s28, 256  ;;  %p176_p2 = scmp.lt.s32.totalorder %s50_s28, %s50_s28 }
  0x23   :  { %p172_p1 = scmp.ne.s32.totalorder %s50_s28, %s171_s5  ;;  %p177_p3 = scmp.lt.s32.totalorder %s171_s5, %s171_s5 }
  0x25   :  { %p178_p4 = por %p177_p3, %p176_p2 }
  0x27   :  { %p179_p5 = pnand %p178_p4, %p172_p1 }
  0x29   :  { %182 = shalt.err (!%p179_p5)
}
  0x2a   :  { %52 = dma.hbm_to_vmem [thread:$0]  %s259_s3, 256, %s50_s28, [#allocation9]  }
  0x2b   :  { %203 = dma.done.wait [#allocation3], 256  }
  0x2c   :  { %204 = vsyncadd [#allocation3], 4294967040 }
  0x2d   :  { %205 = dma.done.wait [#allocation6], 512  }
  0x2e   :  { %206 = vsyncadd [#allocation6], 4294966784 }
  0x2f   :  { %207 = dma.done.wait [#allocation9], 256  }
  0x30   :  { %208 = vsyncadd [#allocation9], 4294967040  ;;  %v65_v0 = vld [vmem:[#allocation2] sm:$0xff]  ;;  %v67_v1 = vld [vmem:[#allocation5] sm:$0xff]  ;;  %s215_s2 = smov [#allocation10]  }
  0x31   :  { %v71_v2 = vld [vmem:[#allocation7] sm:$0xff]  ;;  %v69_v3 = vadd.f32 %v67_v1, %v65_v0  ;;  %v66_v4 = vld [vmem:[#allocation2 + $0x8] sm:$0xff]  ;;  %v68_v5 = vld [vmem:[#allocation5 + $0x8] sm:$0xff]  ;;  %s87_s7 = sshll.u32 %s215_s2, 4  ;;  %s88_s7 = int_to_ptr.vmem [resolvable:$true] %s87_s7 }
  0x32   :  { %v75_v6 = vld [vmem:[#allocation8] sm:$0xff]  ;;  %v70_v7 = vadd.f32 %v68_v5, %v66_v4  ;;  %v72_v8 = vld [vmem:[#allocation7 + $0x8] sm:$0xff]  ;;  %v76_v10 = vld [vmem:[#allocation8 + $0x8] sm:$0xff]  ;;  %s183_s3 = scalar_lea.vmem %s88_s7, 256  ;;  %p188_p7 = scmp.lt.s32.totalorder %s88_s7, %s88_s7 }
  0x33   :  { %v73_v9 = vadd.f32 %v71_v2, %v69_v3  ;;  %p184_p6 = scmp.ne.s32.totalorder %s88_s7, %s183_s3  ;;  %p189_p8 = scmp.lt.s32.totalorder %s183_s3, %s183_s3 }
  0x34   :  { %v74_v11 = vadd.f32 %v72_v8, %v70_v7 }
  0x35   :  { %v77_v12 = vadd.f32 %v75_v6, %v73_v9  ;;  %p190_p9 = por %p189_p8, %p188_p7 }
  0x36   :  { %v78_v13 = vadd.f32 %v76_v10, %v74_v11 }
  0x37   :  { %79 = vst [vmem:[#allocation10] sm:$0xff] %v77_v12  ;;  %p191_p10 = pnand %p190_p9, %p184_p6 }
  0x38   :  { %80 = vst [vmem:[#allocation10 + $0x8] sm:$0xff] %v78_v13 }
  0x39   :  { %194 = shalt.err (!%p191_p10)
}
  0x3a   :  { %90 = dma.vmem_to_hbm [thread:$0]  %s88_s7, 256, %s260_s4, [#allocation4]  }
  0x3b   :  { %209 = dma.done.wait [#allocation4], 256  }
  0x3c   :  { %210 = vsyncadd [#allocation4], 4294967040 }
  0x3d   :  { %94 = vsyncpa [#allocation3], 1 }
  0x3e   :  { %95 = vsyncpa [#allocation6], 1 }
  0x3f   :  { %96 = vsyncpa [#allocation9], 1 }
  0x40   :  { %97 = vsyncpa [#allocation4], 1 }

</bundles_post_ra>
